<compile_context>
chip_gen: v7x
topology: tpu7x:2x2x1
jax: 0.10.0
libtpu: 0.0.40
codegen_flags: <defaults>
</compile_context>

<pallas_src>
import jax
import jax.numpy as jnp
from jax.experimental import pallas as pl
from jax.experimental.pallas import tpu as pltpu


# ----------------------------- config (synthetic) -----------------------------
NUMBER_OF_LAYERS = 3
NUMBER_CLASSES = 10      # input feature dim of linear1
C1 = 32                  # channel_1_size
C2 = 16                  # channel_2_size
K1 = 4                   # kernel_1_size
S1 = 1                   # stride_1_size (irrelevant: deconv1 input length is 1)
K2 = 5                   # kernel_2_size
S2 = 3                   # stride_2_size
L1 = K1                          # length after deconv1 ( (1-1)*S1 + K1 )
L2 = (L1 - 1) * S2 + K2          # length after deconv2 (= 14)
OUT_LEN = 500                    # F.interpolate target size
OUT_CH = 4                       # final out_channels
OUT_FLAT = OUT_CH * OUT_LEN      # 2000
LANE = 128
OUT_PAD = ((OUT_FLAT + LANE - 1) // LANE) * LANE   # 2048: lane-dense output slab


def _round_up(x, m):
    return ((x + m - 1) // m) * m


# ----------------------------- Pallas kernel -----------------------------
def conv_forward_kernel(x_ref, w_ref, b_ref, o_ref):
    # Entire (linear) network folded into one weight: single MXU matmul + bias add.
    o_ref[...] = (
        jnp.dot(x_ref[...], w_ref[...], preferred_element_type=jnp.float32)
        + b_ref[...]
    )


# ----------------------------- weight folding (wrapper-side, runs once) -----------------------------
def _fold_weights(w_lin, b_lin, w_deconv1, w_deconv2):
    """Collapse linear1 -> deconv1 -> deconv2 -> nearest-interp into one matrix + bias."""
    # torch Linear: y = x @ W.T + b ; W is (C1, NC)
    wlin_t = jnp.transpose(w_lin).astype(jnp.float32)             # (NC, C1)
    blin = b_lin.reshape(1, C1).astype(jnp.float32)               # (1, C1)

    # deconv1 on a length-1 input: out[b,o,t] = sum_c h[b,c] * W1[c,o,t] -> (C1, C2*K1)
    w1_flat = w_deconv1.reshape(C1, C2 * K1).astype(jnp.float32)

    # deconv2 scatter matrix: M2[c*K1+j, o*L2 + (j*S2 + k)] = W2[c,o,k]
    m2 = jnp.zeros((C2, K1, OUT_CH, L2), dtype=jnp.float32)
    for j in range(K1):
        m2 = m2.at[:, j, :, j * S2:j * S2 + K2].set(w_deconv2.astype(jnp.float32))
    m2 = m2.reshape(C2 * K1, OUT_CH * L2)                          # (C2*K1, 4*L2)

    # nearest interpolation (PyTorch default 'nearest'): src = floor(i * L2 / OUT_LEN)
    idx = (jnp.arange(OUT_LEN) * L2) // OUT_LEN                    # (500,)
    g = (jnp.arange(L2)[:, None] == idx[None, :]).astype(jnp.float32)   # (L2, 500)
    g_block = jnp.kron(jnp.eye(OUT_CH, dtype=jnp.float32), g)           # (4*L2, 2000)
    g_block = jnp.pad(g_block, ((0, 0), (0, OUT_PAD - OUT_FLAT)))       # pad to 2048 lanes

    chain = w1_flat @ m2 @ g_block                                 # (C1, OUT_PAD)
    w_total = wlin_t @ chain                                       # (NC, OUT_PAD)  ~80 KB
    b_total = blin @ chain                                         # (1, OUT_PAD)
    return w_total, b_total


def conv_forward(x, w_lin, b_lin, w_deconv1, w_deconv2, *, tile_b=128):
    """Full forward pass.  x: (B, NUMBER_CLASSES) float32.  Returns (B, 4, 500)."""
    B = x.shape[0]
    w_total, b_total = _fold_weights(w_lin, b_lin, w_deconv1, w_deconv2)

    # Batch tiling: weight/bias stay VMEM-resident (index_map -> (0,0)); x / out stream in
    # TB-row tiles, auto double-buffered by BlockSpec.  Small B collapses to a single block.
    TB = min(tile_b, _round_up(B, 8))
    B_pad = _round_up(B, TB)
    x_pad = jnp.pad(x.astype(jnp.float32), ((0, B_pad - B), (0, 0)))

    out_pad = pl.pallas_call(
        conv_forward_kernel,
        out_shape=jax.ShapeDtypeStruct((B_pad, OUT_PAD), jnp.float32),
        grid=(B_pad // TB,),
        in_specs=[
            pl.BlockSpec((TB, NUMBER_CLASSES), lambda i: (i, 0)),
            pl.BlockSpec((NUMBER_CLASSES, OUT_PAD), lambda i: (0, 0)),
            pl.BlockSpec((1, OUT_PAD), lambda i: (0, 0)),
        ],
        out_specs=pl.BlockSpec((TB, OUT_PAD), lambda i: (i, 0)),
        compiler_params=pltpu.CompilerParams(
            dimension_semantics=("parallel",)),   # shards batch across v7x's 2 TCs
    )(x_pad, w_total, b_total)

    return out_pad[:B, :OUT_FLAT].reshape(B, OUT_CH, OUT_LEN)


# ----------------------------- pure-JAX reference -----------------------------
def conv_forward_ref(x, w_lin, b_lin, w_deconv1, w_deconv2):
    h = x @ w_lin.T + b_lin                                    # (B, C1)
    d1 = jnp.einsum('bc,cok->bok', h, w_deconv1)               # (B, C2, K1)
    d2 = jnp.zeros((x.shape[0], OUT_CH, L2), dtype=jnp.float32)
    for j in range(K1):
        d2 = d2.at[:, :, j * S2:j * S2 + K2].add(
            jnp.einsum('bc,cok->bok', d1[:, :, j], w_deconv2))
    idx = (jnp.arange(OUT_LEN) * L2) // OUT_LEN
    return d2[:, :, idx]


# ----------------------------- main -----------------------------
if __name__ == "__main__":
    key = jax.random.PRNGKey(0)
    k_x, k_wl, k_bl, k_w1, k_w2 = jax.random.split(key, 5)

    B = 8
    x = jax.random.normal(k_x, (B, NUMBER_CLASSES), dtype=jnp.float32)
    # torch-style parameter shapes:
    w_lin = jax.random.normal(k_wl, (C1, NUMBER_CLASSES), dtype=jnp.float32) * 0.1
    b_lin = jax.random.normal(k_bl, (C1,), dtype=jnp.float32) * 0.1
    w_deconv1 = jax.random.normal(k_w1, (C1, C2, K1), dtype=jnp.float32) * 0.1
    w_deconv2 = jax.random.normal(k_w2, (C2, OUT_CH, K2), dtype=jnp.float32) * 0.1

    out = conv_forward(x, w_lin, b_lin, w_deconv1, w_deconv2)
    out = jax.block_until_ready(out)

    ref = conv_forward_ref(x, w_lin, b_lin, w_deconv1, w_deconv2)
    assert out.shape == (B, OUT_CH, OUT_LEN), out.shape
    err = float(jnp.max(jnp.abs(out - ref)))
    assert jnp.allclose(out, ref, atol=1e-4, rtol=1e-4), err

    print("KERNEL_OK")
</pallas_src>

<mosaic_0001>
module attributes {stable_mosaic.version = 11 : i64} {
  func.func @conv_forward_kernel(%arg0: i32, %arg1: memref<8x10xf32, #tpu.memory_space<vmem>>, %arg2: memref<10x2048xf32, #tpu.memory_space<vmem>>, %arg3: memref<1x2048xf32, #tpu.memory_space<vmem>>, %arg4: memref<8x2048xf32, #tpu.memory_space<vmem>>) attributes {dimension_semantics = [#tpu.dimension_semantics<parallel>], iteration_bounds = array<i64: 1>, scalar_prefetch = 0 : i64, scratch_operands = 0 : i64, tpu.core_type = #tpu.core_type<tc>, window_params = [{transform_indices = @transform_0, window_bounds = array<i64: 8, 10>}, {pipeline_mode = #tpu.pipeline_mode<synchronous>, transform_indices = @transform_1, window_bounds = array<i64: 10, 2048>}, {pipeline_mode = #tpu.pipeline_mode<synchronous>, transform_indices = @transform_2, window_bounds = array<i64: 1, 2048>}, {transform_indices = @transform_3, window_bounds = array<i64: 8, 2048>}]} {
    %c0 = arith.constant 0 : index
    %c0_0 = arith.constant 0 : index
    %0 = vector.load %arg1[%c0, %c0_0] : memref<8x10xf32, #tpu.memory_space<vmem>>, vector<8x10xf32>
    %c0_1 = arith.constant 0 : index
    %c0_2 = arith.constant 0 : index
    %1 = vector.load %arg2[%c0_1, %c0_2] : memref<10x2048xf32, #tpu.memory_space<vmem>>, vector<10x2048xf32>
    %cst = arith.constant dense<0.000000e+00> : vector<8x2048xf32>
    %2 = tpu.matmul %0, %1, %cst {dimension_numbers = #tpu.dot_dimension_numbers<[1], [0], [0], [1], [0, 0, 1, 1], [], []>} : vector<8x10xf32>, vector<10x2048xf32>, vector<8x2048xf32> -> vector<8x2048xf32>
    %c0_3 = arith.constant 0 : index
    %c0_4 = arith.constant 0 : index
    %3 = vector.load %arg3[%c0_3, %c0_4] : memref<1x2048xf32, #tpu.memory_space<vmem>>, vector<1x2048xf32>
    %4 = vector.broadcast %3 : vector<1x2048xf32> to vector<8x2048xf32>
    %5 = arith.addf %2, %4 : vector<8x2048xf32>
    %c0_5 = arith.constant 0 : index
    %c0_6 = arith.constant 0 : index
    %6 = vector.load %arg4[%c0_5, %c0_6] : memref<8x2048xf32, #tpu.memory_space<vmem>>, vector<8x2048xf32>
    tpu.vector_store %arg4[%c0_5, %c0_6], %5 {strides = array<i32>} : memref<8x2048xf32, #tpu.memory_space<vmem>>, vector<8x2048xf32>,
    return
  }
  func.func @transform_0(%arg0: i32) -> (i32, i32) {
    %c0_i32 = arith.constant 0 : i32
    %c0_i32_0 = arith.constant 0 : i32
    return %arg0, %c0_i32 : i32, i32
  }
  func.func @transform_1(%arg0: i32) -> (i32, i32) {
    %c0_i32 = arith.constant 0 : i32
    %c0_i32_0 = arith.constant 0 : i32
    %c0_i32_1 = arith.constant 0 : i32
    return %c0_i32, %c0_i32_0 : i32, i32
  }
  func.func @transform_2(%arg0: i32) -> (i32, i32) {
    %c0_i32 = arith.constant 0 : i32
    %c0_i32_0 = arith.constant 0 : i32
    %c0_i32_1 = arith.constant 0 : i32
    return %c0_i32, %c0_i32_0 : i32, i32
  }
  func.func @transform_3(%arg0: i32) -> (i32, i32) {
    %c0_i32 = arith.constant 0 : i32
    %c0_i32_0 = arith.constant 0 : i32
    return %arg0, %c0_i32 : i32, i32
  }
}

</mosaic_0001>

<bundles_post_ra>
// kernel: tpu_custom_call.1
= control target key start
LH: loop header
LB: loop body
LE: loop exit
PB: predicated region body
PF: predicated region fallthrough
CT: control target
= control target key end

     0   :  { %8 = vsyncpa [#allocation3], 0  ;;  %s1134_s0 = inlined_call_operand.hbm [shape: f32[8,10], index: 0, kind: input, shape index: {}]   ;;  %s1135_s1 = inlined_call_operand.hbm [shape: f32[10,2048], index: 1, kind: input, shape index: {}]   ;;  %s1136_s2 = inlined_call_operand.hbm [shape: f32[1,2048], index: 2, kind: input, shape index: {}]   ;;  %s1137_s3 = inlined_call_operand.hbm [shape: f32[8,2048], index: 3, kind: output, shape index: {}]  }
   0x1   :  { %9 = vsyncpa [#allocation6], 0 }
   0x2   :  { %10 = vsyncpa [#allocation4], 0  ;;  %s996_s12 = smov [#allocation5]   ;;  %s902_s16 = scalar_lea.hbm %s1135_s1, 4096 }
   0x3   :  { %s26_s13 = sshll.u32 %s996_s12, 4  ;;  %p903_p0 = scmp.ne.s32.totalorder %s1135_s1, %s902_s16  ;;  %s27_s13 = int_to_ptr.vmem [resolvable:$true] %s26_s13 }
   0x4   :  { %p906_p1 = scmp.lt.u32.totalorder %s902_s16, %s1135_s1 }
   0x6   :  { %p908_p2 = pnand %p906_p1, %p903_p0 }
   0x8   :  { %911 = shalt.err (!%p908_p2)
}
   0x9   :  { %s912_s21 = scalar_lea.vmem %s27_s13, 4096  ;;  %p917_p4 = scmp.lt.s32.totalorder %s27_s13, %s27_s13 }
   0xa   :  { %p913_p3 = scmp.ne.s32.totalorder %s27_s13, %s912_s21  ;;  %p918_p5 = scmp.lt.s32.totalorder %s912_s21, %s912_s21 }
   0xc   :  { %p919_p6 = por %p918_p5, %p917_p4 }
   0xe   :  { %p920_p7 = pnand %p919_p6, %p913_p3 }
  0x10   :  { %923 = shalt.err (!%p920_p7)
}
  0x11   :  { %s997_s22 = smov 2048   ;;  %s998_s23 = smov 128  }
  0x12   :  { %32 = dma.hbm_to_vmem [thread:$0]  %s1135_s1, 4096, %s27_s13, [#allocation6], %s997_s22, %s997_s22, %s998_s23  }
  0x13   :  { %s999_s26 = smov [#allocation2]   ;;  %s1000_s28 = smov [#allocation7]  }
  0x14   :  { %s17_s27 = sshll.u32 %s999_s26, 4  ;;  %s39_s29 = sshll.u32 %s1000_s28, 4  ;;  %s18_s27 = int_to_ptr.vmem [resolvable:$true] %s17_s27  ;;  %s40_s29 = int_to_ptr.vmem [resolvable:$true] %s39_s29 }
  0x15   :  { %s924_s5 = scalar_lea.hbm %s1134_s0, 128 }
  0x16   :  { %p925_p8 = scmp.ne.s32.totalorder %s1134_s0, %s924_s5  ;;  %p928_p9 = scmp.lt.u32.totalorder %s924_s5, %s1134_s0 }
  0x18   :  { %p930_p10 = pnand %p928_p9, %p925_p8 }
  0x1a   :  { %933 = shalt.err (!%p930_p10)
}
  0x1b   :  { %s934_s1 = scalar_lea.vmem %s18_s27, 128  ;;  %p939_p12 = scmp.lt.s32.totalorder %s18_s27, %s18_s27 }
  0x1c   :  { %p935_p11 = scmp.ne.s32.totalorder %s18_s27, %s934_s1  ;;  %p940_p13 = scmp.lt.s32.totalorder %s934_s1, %s934_s1 }
  0x1e   :  { %p941_p0 = por %p940_p13, %p939_p12 }
  0x20   :  { %p942_p1 = pnand %p941_p0, %p935_p11 }
  0x22   :  { %945 = shalt.err (!%p942_p1)
}
  0x23   :  { %20 = dma.hbm_to_vmem [thread:$0]  %s1134_s0, 128, %s18_s27, [#allocation3]  }
  0x24   :  { %s946_s14 = scalar_lea.hbm %s1136_s2, 256 }
  0x25   :  { %p947_p2 = scmp.ne.s32.totalorder %s1136_s2, %s946_s14  ;;  %p950_p3 = scmp.lt.u32.totalorder %s946_s14, %s1136_s2 }
  0x27   :  { %p952_p4 = pnand %p950_p3, %p947_p2 }
  0x29   :  { %955 = shalt.err (!%p952_p4)
}
  0x2a   :  { %s956_s19 = scalar_lea.vmem %s40_s29, 256  ;;  %p961_p6 = scmp.lt.s32.totalorder %s40_s29, %s40_s29 }
  0x2b   :  { %p957_p5 = scmp.ne.s32.totalorder %s40_s29, %s956_s19  ;;  %p962_p7 = scmp.lt.s32.totalorder %s956_s19, %s956_s19 }
  0x2d   :  { %p963_p8 = por %p962_p7, %p961_p6 }
  0x2f   :  { %p964_p9 = pnand %p963_p8, %p957_p5 }
  0x31   :  { %967 = shalt.err (!%p964_p9)
}
  0x32   :  { %42 = dma.hbm_to_vmem [thread:$0]  %s1136_s2, 256, %s40_s29, [#allocation6]  }
  0x33   :  { %990 = dma.done.wait [#allocation3], 128  }
  0x34   :  { %991 = vsyncadd [#allocation3], 4294967168 }
  0x35   :  { %992 = dma.done.wait [#allocation6], 4352  }
  0x36   :  { %993 = vsyncadd [#allocation6], 4294962944  ;;  %v1001_v0 = vmov 0.0   ;;  %vm173_vm0 = vcmask 1041408   ;;  %vm1002_vm1 = vmmov 1   ;;  %v54_v2 = vld [vmem:[#allocation5 + $0x8] sm:$0xff]  ;;  %v89_v51 = vlaneseq }
  0x37   :  { %286 = vmatprep.mubr.f32.mxu0 %v1001_v0  ;;  %357 = vmatprep.mubr.f32.mxu1 %v1001_v0  ;;  %vm1062_vm2 = vmpackc.low %vm173_vm0, %vm1002_vm1  ;;  %v70_v3 = vld [vmem:[#allocation5 + $0x88] sm:$0x3]  ;;  %v56_v4 = vld [vmem:[#allocation5 + $0x18] sm:$0xff]  ;;  %vm169_vm3 = vcmask 80896   ;;  %s1003_s2 = smov [#allocation8]  }
  0x38   :  { %v846_v5 = vpack.c.bf16 %v70_v3, %v54_v2  ;;  %v72_v6 = vld [vmem:[#allocation5 + $0x98] sm:$0x3]  ;;  %v53_v7 = vld [vmem:[#allocation5] sm:$0xff]  ;;  %v55_v11 = vld [vmem:[#allocation5 + $0x10] sm:$0xff]  ;;  %v90_v52 = vshrl.u32 %v89_v51, 7  ;;  %s812_s21 = sshll.u32 %s1003_s2, 4  ;;  %s813_s21 = int_to_ptr.vmem [resolvable:$true] %s812_s21 }
  0x39   :  { %v69_v8 = vld [vmem:[#allocation5 + $0x80] sm:$0x3]  ;;  %v852_v9 = vpack.c.bf16 %v72_v6, %v56_v4  ;;  %v71_v12 = vld [vmem:[#allocation5 + $0x90] sm:$0x3]  ;;  %v1066_v13 = vld [vmem:[#allocation2] sm:$0xff]  ;;  %s968_s22 = scalar_lea.vmem %s813_s21, 2048  ;;  %p973_p11 = scmp.lt.s32.totalorder %s813_s21, %s813_s21 }
  0x3a   :  { %v849_v10 = vpack.c.bf16 %v69_v8, %v53_v7  ;;  %848 = vmatprep.subr.msk.bf16.mxu0 %vm1062_vm2, %v846_v5  ;;  %v855_v14 = vpack.c.bf16 %v71_v12, %v55_v11  ;;  %v58_v15 = vld [vmem:[#allocation5 + $0x28] sm:$0xff]  ;;  %v60_v17 = vld [vmem:[#allocation5 + $0x38] sm:$0xff]  ;;  %v57_v20 = vld [vmem:[#allocation5 + $0x20] sm:$0xff]  ;;  %v91_v53 = vsub.s32 0, %v90_v52  ;;  %v99_v55 = vsub.s32 2, %v90_v52  ;;  %p969_p10 = scmp.ne.s32.totalorder %s813_s21, %s968_s22  ;;  %p974_p12 = scmp.lt.s32.totalorder %s968_s22, %s968_s22 }
  0x3b   :  { %v74_v16 = vld [vmem:[#allocation5 + $0xa8] sm:$0x3]  ;;  %854 = vmatprep.subr.msk.bf16.mxu1 %vm1062_vm2, %v852_v9  ;;  %v76_v19 = vld [vmem:[#allocation5 + $0xb8] sm:$0x3]  ;;  %v73_v21 = vld [vmem:[#allocation5 + $0xa0] sm:$0x3] }
  0x3c   :  { %851 = vmatpush1.bf16.msk.msra.mxu0 %vm1062_vm2, %v849_v10  ;;  %v858_v18 = vpack.c.bf16 %v74_v16, %v58_v15  ;;  %857 = vmatpush1.bf16.msk.msra.mxu1 %vm1062_vm2, %v855_v14  ;;  %v864_v22 = vpack.c.bf16 %v76_v19, %v60_v17  ;;  %v861_v23 = vpack.c.bf16 %v73_v21, %v57_v20  ;;  %v59_v24 = vld [vmem:[#allocation5 + $0x30] sm:$0xff]  ;;  %v62_v26 = vld [vmem:[#allocation5 + $0x48] sm:$0xff]  ;;  %v64_v29 = vld [vmem:[#allocation5 + $0x58] sm:$0xff]  ;;  %v95_v56 = vsub.s32 1, %v90_v52  ;;  %p975_p13 = por %p974_p12, %p973_p11 }
  0x3d   :  { %v75_v25 = vld [vmem:[#allocation5 + $0xb0] sm:$0x3]  ;;  %v78_v28 = vld [vmem:[#allocation5 + $0xc8] sm:$0x3]  ;;  %v80_v30 = vld [vmem:[#allocation5 + $0xd8] sm:$0x3] }
  0x3e   :  { %860 = vmatprep.subr.msk.bf16.mxu0 %vm1062_vm2, %v858_v18  ;;  %v867_v27 = vpack.c.bf16 %v75_v25, %v59_v24  ;;  %866 = vmatprep.subr.msk.bf16.mxu1 %vm1062_vm2, %v864_v22  ;;  %v870_v31 = vpack.c.bf16 %v78_v28, %v62_v26  ;;  %v876_v32 = vpack.c.bf16 %v80_v30, %v64_v29  ;;  %v61_v33 = vld [vmem:[#allocation5 + $0x40] sm:$0xff]  ;;  %v63_v35 = vld [vmem:[#allocation5 + $0x50] sm:$0xff]  ;;  %v66_v38 = vld [vmem:[#allocation5 + $0x68] sm:$0xff]  ;;  %v103_v57 = vsub.s32 3, %v90_v52  ;;  %p976_p0 = pnand %p975_p13, %p969_p10 }
  0x3f   :  { %824 = vmatmul.mubr.msk.f32.vlgmr.msra.gmra.mrb[0].mxu0 %vm169_vm3, %v1066_v13  ;;  %v77_v34 = vld [vmem:[#allocation5 + $0xc0] sm:$0x3]  ;;  %827 = vmatmul.mubr.msk.f32.vlgmr.msra.gmra.mrb[0].mxu1 %vm169_vm3, %v1066_v13  ;;  %v79_v37 = vld [vmem:[#allocation5 + $0xd0] sm:$0x3]  ;;  %v82_v39 = vld [vmem:[#allocation5 + $0xe8] sm:$0x3] }
  0x40   :  { %863 = vmatpush1.bf16.msk.msra.mxu0 %vm1062_vm2, %v861_v23  ;;  %v873_v36 = vpack.c.bf16 %v77_v34, %v61_v33  ;;  %869 = vmatpush1.bf16.msk.msra.mxu1 %vm1062_vm2, %v867_v27  ;;  %v879_v40 = vpack.c.bf16 %v79_v37, %v63_v35  ;;  %v68_v41 = vld [vmem:[#allocation5 + $0x78] sm:$0xff]  ;;  %v65_v43 = vld [vmem:[#allocation5 + $0x60] sm:$0xff]  ;;  %v882_v44 = vpack.c.bf16 %v82_v39, %v66_v38  ;;  %v67_v46 = vld [vmem:[#allocation5 + $0x70] sm:$0xff]  ;;  %v107_v59 = vsub.s32 4, %v90_v52 }
  0x41   :  { %428 = vmatprep.mubr.f32.mxu0 %v1001_v0  ;;  %v84_v42 = vld [vmem:[#allocation5 + $0xf8] sm:$0x3]  ;;  %499 = vmatprep.mubr.f32.mxu1 %v1001_v0  ;;  %v81_v45 = vld [vmem:[#allocation5 + $0xe0] sm:$0x3]  ;;  %v83_v47 = vld [vmem:[#allocation5 + $0xf0] sm:$0x3] }
  0x42   :  { %872 = vmatprep.subr.msk.bf16.mxu0 %vm1062_vm2, %v870_v31  ;;  %878 = vmatprep.subr.msk.bf16.mxu1 %vm1062_vm2, %v876_v32  ;;  %v888_v48 = vpack.c.bf16 %v84_v42, %v68_v41  ;;  %v885_v49 = vpack.c.bf16 %v81_v45, %v65_v43  ;;  %v891_v50 = vpack.c.bf16 %v83_v47, %v67_v46  ;;  %v85_v54 = vld [vmem:[#allocation7] sm:$0xff]  ;;  %v115_v62 = vsub.s32 6, %v90_v52  ;;  %v86_v12 = vld [vmem:[#allocation7 + $0x8] sm:$0xff] }
  0x43   :  { %830 = vmatmul.mubr.msk.f32.vlgmr.msra.gmra.mrb[2].mxu0 %vm169_vm3, %v1066_v13  ;;  %833 = vmatmul.mubr.msk.f32.vlgmr.msra.gmra.mrb[2].mxu1 %vm169_vm3, %v1066_v13  ;;  %v92_v58 = vrot.slane %v85_v54, %v91_v53  ;;  %v100_v60 = vrot.slane %v85_v54, %v99_v55  ;;  %v96_v61 = vrot.slane %v85_v54, %v95_v56  ;;  %v111_v63 = vsub.s32 5, %v90_v52 }
  0x44   :  { %875 = vmatpush1.bf16.msk.msra.mxu0 %vm1062_vm2, %v873_v36  ;;  %881 = vmatpush1.bf16.msk.msra.mxu1 %vm1062_vm2, %v879_v40  ;;  %v119_v1 = vsub.s32 7, %v90_v52  ;;  %v108_v6 = vrot.slane %v85_v54, %v107_v59  ;;  %v116_v10 = vrot.slane %v85_v54, %v115_v62  ;;  %v124_v19 = vrot.slane %v86_v12, %v91_v53 }
  0x45   :  { %570 = vmatprep.mubr.f32.mxu0 %v1001_v0  ;;  %641 = vmatprep.mubr.f32.mxu1 %v1001_v0  ;;  %v112_v11 = vrot.slane %v85_v54, %v111_v63  ;;  %v132_v23 = vrot.slane %v86_v12, %v99_v55  ;;  %v128_v24 = vrot.slane %v86_v12, %v95_v56 }
  0x46   :  { %884 = vmatprep.subr.msk.bf16.mxu0 %vm1062_vm2, %v882_v44  ;;  %890 = vmatprep.subr.msk.bf16.mxu1 %vm1062_vm2, %v888_v48  ;;  %v120_v14 = vrot.slane %v85_v54, %v119_v1  ;;  %v136_v26 = vrot.slane %v86_v12, %v103_v57  ;;  %v140_v31 = vrot.slane %v86_v12, %v107_v59 }
  0x47   :  { %836 = vmatmul.mubr.msk.f32.vlgmr.msra.gmra.mrb[4].mxu0 %vm169_vm3, %v1066_v13  ;;  %839 = vmatmul.mubr.msk.f32.vlgmr.msra.gmra.mrb[4].mxu1 %vm169_vm3, %v1066_v13  ;;  %v148_v35 = vrot.slane %v86_v12, %v115_v62  ;;  %v144_v36 = vrot.slane %v86_v12, %v111_v63  ;;  %v152_v38 = vrot.slane %v86_v12, %v119_v1 }
  0x48   :  { %887 = vmatpush1.bf16.msk.msra.mxu0 %vm1062_vm2, %v885_v49  ;;  %893 = vmatpush1.bf16.msk.msra.mxu1 %vm1062_vm2, %v891_v50 }
  0x49   :  { %712 = vmatprep.mubr.f32.mxu0 %v1001_v0  ;;  %783 = vmatprep.mubr.f32.mxu1 %v1001_v0  ;;  %v104_v0 = vrot.slane %v85_v54, %v103_v57 }
  0x4b   :  { %842 = vmatmul.mubr.msk.f32.vlgmr.msra.gmra.mrb[6].mxu0 %vm169_vm3, %v1066_v13  ;;  %845 = vmatmul.mubr.msk.f32.vlgmr.msra.gmra.mrb[6].mxu1 %vm169_vm3, %v1066_v13 }
 0x112   :  { %v288_v2 = vpop.f32.mrb[0].mxu0  ;;  %v359_v4 = vpop.f32.mrb[0].mxu1 }
 0x113   :  { %v289_v3 = vadd.f32 %v288_v2, %v92_v58  ;;  %v290_v5 = vpop.f32.mrb[1].mxu0  ;;  %v360_v7 = vadd.f32 %v359_v4, %v100_v60  ;;  %v361_v9 = vpop.f32.mrb[1].mxu1 }
 0x114   :  { %v291_v8 = vadd.f32 %v290_v5, %v96_v61  ;;  %v362_v13 = vadd.f32 %v361_v9, %v104_v0 }
 0x115   :  { %790 = vst [vmem:[#allocation8] sm:$0xff] %v289_v3  ;;  %792 = vst [vmem:[#allocation8 + $0x10] sm:$0xff] %v360_v7 }
 0x116   :  { %791 = vst [vmem:[#allocation8 + $0x8] sm:$0xff] %v291_v8  ;;  %v430_v15 = vpop.f32.mrb[2].mxu0  ;;  %793 = vst [vmem:[#allocation8 + $0x18] sm:$0xff] %v362_v13  ;;  %v501_v17 = vpop.f32.mrb[2].mxu1 }
 0x117   :  { %v431_v16 = vadd.f32 %v430_v15, %v108_v6  ;;  %v432_v18 = vpop.f32.mrb[3].mxu0  ;;  %v502_v20 = vadd.f32 %v501_v17, %v116_v10  ;;  %v503_v22 = vpop.f32.mrb[3].mxu1 }
 0x118   :  { %v433_v21 = vadd.f32 %v432_v18, %v112_v11  ;;  %v504_v25 = vadd.f32 %v503_v22, %v120_v14 }
 0x119   :  { %794 = vst [vmem:[#allocation8 + $0x20] sm:$0xff] %v431_v16  ;;  %796 = vst [vmem:[#allocation8 + $0x30] sm:$0xff] %v502_v20 }
 0x11a   :  { %795 = vst [vmem:[#allocation8 + $0x28] sm:$0xff] %v433_v21  ;;  %v572_v27 = vpop.f32.mrb[4].mxu0  ;;  %797 = vst [vmem:[#allocation8 + $0x38] sm:$0xff] %v504_v25  ;;  %v643_v29 = vpop.f32.mrb[4].mxu1 }
 0x11b   :  { %v573_v28 = vadd.f32 %v572_v27, %v124_v19  ;;  %v574_v30 = vpop.f32.mrb[5].mxu0  ;;  %v644_v32 = vadd.f32 %v643_v29, %v132_v23  ;;  %v645_v34 = vpop.f32.mrb[5].mxu1 }
 0x11c   :  { %v575_v33 = vadd.f32 %v574_v30, %v128_v24  ;;  %v646_v37 = vadd.f32 %v645_v34, %v136_v26 }
 0x11d   :  { %798 = vst [vmem:[#allocation8 + $0x40] sm:$0xff] %v573_v28  ;;  %800 = vst [vmem:[#allocation8 + $0x50] sm:$0xff] %v644_v32 }
 0x11e   :  { %799 = vst [vmem:[#allocation8 + $0x48] sm:$0xff] %v575_v33  ;;  %v714_v39 = vpop.f32.mrb[6].mxu0  ;;  %801 = vst [vmem:[#allocation8 + $0x58] sm:$0xff] %v646_v37  ;;  %v785_v41 = vpop.f32.mrb[6].mxu1 }
 0x11f   :  { %v715_v40 = vadd.f32 %v714_v39, %v140_v31  ;;  %v716_v42 = vpop.f32.mrb[7].mxu0  ;;  %v786_v43 = vadd.f32 %v785_v41, %v148_v35  ;;  %v787_v45 = vpop.f32.mrb[7].mxu1 }
 0x120   :  { %v717_v44 = vadd.f32 %v716_v42, %v144_v36  ;;  %v788_v46 = vadd.f32 %v787_v45, %v152_v38 }
 0x121   :  { %802 = vst [vmem:[#allocation8 + $0x60] sm:$0xff] %v715_v40  ;;  %804 = vst [vmem:[#allocation8 + $0x70] sm:$0xff] %v786_v43 }
 0x122   :  { %803 = vst [vmem:[#allocation8 + $0x68] sm:$0xff] %v717_v44  ;;  %805 = vst [vmem:[#allocation8 + $0x78] sm:$0xff] %v788_v46 }
 0x123   :  { %979 = shalt.err (!%p976_p0)
}
 0x124   :  { %s980_s25 = scalar_lea.hbm %s1137_s3, 2048 }
 0x125   :  { %p981_p1 = scmp.ne.s32.totalorder %s1137_s3, %s980_s25  ;;  %p984_p2 = scmp.lt.u32.totalorder %s980_s25, %s1137_s3 }
 0x127   :  { %p986_p3 = pnand %p984_p2, %p981_p1 }
 0x129   :  { %989 = shalt.err (!%p986_p3)
}
 0x12a   :  { %815 = dma.vmem_to_hbm [thread:$0]  %s813_s21, 2048, %s1137_s3, [#allocation4]  }
 0x12b   :  { %994 = dma.done.wait [#allocation4], 2048  }
 0x12c   :  { %995 = vsyncadd [#allocation4], 4294965248 }
 0x12d   :  { %819 = vsyncpa [#allocation3], 1 }
 0x12e   :  { %820 = vsyncpa [#allocation6], 1 }
 0x12f   :  { %821 = vsyncpa [#allocation4], 1 }

</bundles_post_ra>
